<compile_context>
chip_gen: v5e
topology: v5e:2x2
jax: 0.10.0
libtpu: 0.0.40
codegen_flags: <defaults>
</compile_context>

<pallas_src>
import functools

import jax
import jax.numpy as jnp
from jax.experimental import pallas as pl
from jax.experimental.pallas import tpu as pltpu

_LANES = 128


def _rehu_kernel(x_ref, o_ref, *, a, b):
    # Compute internally in f32 (free: the kernel is HBM-bound) and cast on
    # store. sign(x) * x^2 == x * |x| saves a couple of VALU ops per vreg.
    x = x_ref[...].astype(jnp.float32)
    quad = (0.5 * a) * x * jnp.abs(x)
    clamped = jnp.clip(quad, 0.0, -b)          # clamp(min=0, max=-b)
    o_ref[...] = jnp.maximum(clamped, x + b).astype(o_ref.dtype)


def _rehu_jnp(x, a, b):
    # Plain-JAX path for tiny tails (< 128 elements) / sub-vreg inputs.
    xf = x.astype(jnp.float32)
    y = jnp.maximum(jnp.clip((0.5 * a) * xf * jnp.abs(xf), 0.0, -b), xf + b)
    return y.astype(x.dtype)


def _align_up(v, m):
    return ((v + m - 1) // m) * m


def _tpu_generation():
    try:
        kind = jax.devices()[0].device_kind.lower()
    except Exception:
        return None
    for gen in (7, 6, 5, 4):
        if f"v{gen}" in kind:
            return gen
    return None


def _streaming_config():
    """Generation-aware (block_bytes, vmem_limit_bytes, tensorcores_per_chip)."""
    gen = _tpu_generation()
    if gen is not None and gen >= 7:
        # v7x: per-step overhead is relatively larger at ~3.2 TB/s -> bigger
        # blocks; 4 buffers x 8 MiB = 32 MiB needs the scoped-VMEM limit
        # raised (64 MiB physical, leave headroom). 2 TensorCores per chip.
        return 8 << 20, 48 << 20, 2
    if gen == 6:
        # v6e: 4 buffers x 4 MiB = 16 MiB fits the 32 MiB default scoped VMEM.
        return 4 << 20, None, 1
    # v5e / unknown: 4 buffers x 2 MiB = 8 MiB fits the 16 MiB default.
    return 2 << 20, None, 1


def _rehu_slab(x2d, a, b, *, block_bytes, vmem_limit_bytes, num_cores):
    rows, lanes = x2d.shape
    dtype = x2d.dtype
    itemsize = jnp.dtype(dtype).itemsize
    packing = max(1, 4 // itemsize)            # 1 f32, 2 bf16, 4 for 8-bit
    row_align = 8 * packing                    # sublane tile height for dtype

    if rows < row_align:
        # Full-extent block (always legal); nothing to split across cores.
        tile_rows, steps = rows, 1
    else:
        max_tile = _align_up(rows, row_align)  # one block covers everything
        target_rows = max(
            row_align,
            (block_bytes // (lanes * itemsize)) // row_align * row_align)
        tile_rows = max(row_align, min(target_rows, max_tile))
        steps = pl.cdiv(rows, tile_rows)

        if num_cores > 1 and rows >= num_cores * row_align:
            # Keep every TensorCore busy and split small grids evenly:
            # round the step count up to a multiple of the core count.
            if steps < num_cores or (steps <= 8 and steps % num_cores):
                steps = _align_up(max(steps, num_cores), num_cores)
                tile_rows = max(row_align,
                                _align_up(pl.cdiv(rows, steps), row_align))
                steps = pl.cdiv(rows, tile_rows)

    cp_kwargs = dict(dimension_semantics=("parallel",))
    if vmem_limit_bytes is not None:
        cp_kwargs["vmem_limit_bytes"] = vmem_limit_bytes

    kernel = functools.partial(_rehu_kernel, a=a, b=b)
    n_elems = rows * lanes
    return pl.pallas_call(
        kernel,
        out_shape=jax.ShapeDtypeStruct((rows, lanes), dtype),
        grid_spec=pltpu.PrefetchScalarGridSpec(
            num_scalar_prefetch=0,
            grid=(steps,),
            in_specs=[pl.BlockSpec((tile_rows, lanes), lambda i: (i, 0))],
            out_specs=pl.BlockSpec((tile_rows, lanes), lambda i: (i, 0)),
        ),
        compiler_params=pltpu.CompilerParams(**cp_kwargs),
        cost_estimate=pl.CostEstimate(flops=6 * n_elems, transcendentals=0,
                                      bytes_accessed=2 * n_elems * itemsize),
    )(x2d)


def rehu(x, d=1.0, *, block_bytes=None, vmem_limit_bytes=None, num_cores=None):
    """Apply ReHU elementwise. x: any shape/float dtype. Returns same shape/dtype."""
    if d <= 0:
        raise ValueError("ReHU requires d > 0 (a = 1/d, b = -d/2).")
    a = 1.0 / d
    b = -d / 2.0

    cfg_block, cfg_vmem, cfg_cores = _streaming_config()
    block_bytes = cfg_block if block_bytes is None else block_bytes
    vmem_limit_bytes = cfg_vmem if vmem_limit_bytes is None else vmem_limit_bytes
    num_cores = cfg_cores if num_cores is None else num_cores

    orig_shape = x.shape
    flat = x.reshape(-1)
    n = flat.shape[0]
    n_main = (n // _LANES) * _LANES

    if n_main == 0:
        # Smaller than one vreg row: not worth a kernel launch.
        return _rehu_jnp(flat, a, b).reshape(orig_shape)

    if n_main == n:
        # Zero-copy fast path: flat size is a multiple of 128 -> no pad/slice,
        # exactly one HBM read + one HBM write.
        out = _rehu_slab(flat.reshape(n // _LANES, _LANES), a, b,
                         block_bytes=block_bytes,
                         vmem_limit_bytes=vmem_limit_bytes,
                         num_cores=num_cores)
        return out.reshape(orig_shape)

    # Ragged tail (< 128 elements): kernel on the 128-aligned prefix, tail in
    # plain jnp -- no O(n) pad or post-slice passes.
    # TODO(synk): the concatenate still costs one extra HBM pass; a masked
    # in-kernel tail store would remove it, but ragged sizes are rare here.
    main = _rehu_slab(flat[:n_main].reshape(n_main // _LANES, _LANES), a, b,
                      block_bytes=block_bytes,
                      vmem_limit_bytes=vmem_limit_bytes,
                      num_cores=num_cores).reshape(-1)
    tail = _rehu_jnp(flat[n_main:], a, b)
    return jnp.concatenate([main, tail]).reshape(orig_shape)


def rehu_reference(x, d=1.0):
    a = 1.0 / d
    b = -d / 2.0
    return jnp.maximum(jnp.clip(jnp.sign(x) * (0.5 * a) * x * x, 0.0, -b), x + b)


if __name__ == "__main__":
    key = jax.random.PRNGKey(0)
    d = 1.0  # module hyperparameter: a = 1/d, b = -d/2

    # NCHW-activation-like input (how ReHU is used inside ICNN):
    # n = 2*4*16*16 = 2048 -> zero-copy fast path.
    x = jax.random.normal(key, (2, 4, 16, 16), dtype=jnp.float32) * 2.0
    y = jax.block_until_ready(rehu(x, d))
    assert y.shape == x.shape and y.dtype == x.dtype
    assert jnp.allclose(y, rehu_reference(x, d), atol=1e-6, rtol=1e-6)

    # Ragged size with a 128-aligned prefix: prefix goes through the kernel,
    # 88-element tail is handled in plain jnp (no pad / post-slice passes).
    x2 = jax.random.normal(jax.random.PRNGKey(1), (3, 200), dtype=jnp.float32) * 2.0
    y2 = jax.block_until_ready(rehu(x2, d))
    assert y2.shape == x2.shape and y2.dtype == x2.dtype
    assert jnp.allclose(y2, rehu_reference(x2, d), atol=1e-6, rtol=1e-6)

    # Tiny input (< 128 elements): pure-jnp path.
    x3 = jax.random.normal(jax.random.PRNGKey(2), (3, 5, 7), dtype=jnp.float32) * 2.0
    y3 = jax.block_until_ready(rehu(x3, d))
    assert y3.shape == x3.shape and y3.dtype == x3.dtype
    assert jnp.allclose(y3, rehu_reference(x3, d), atol=1e-6, rtol=1e-6)

    print("KERNEL_OK")
</pallas_src>

<mosaic_0001>
module attributes {stable_mosaic.version = 11 : i64} {
  func.func @_rehu_kernel(%arg0: i32, %arg1: memref<16x128xf32, #tpu.memory_space<vmem>>, %arg2: memref<16x128xf32, #tpu.memory_space<vmem>>) attributes {dimension_semantics = [#tpu.dimension_semantics<parallel>], iteration_bounds = array<i64: 1>, scalar_prefetch = 0 : i64, scratch_operands = 0 : i64, tpu.core_type = #tpu.core_type<tc>, window_params = [{transform_indices = @transform_0, window_bounds = array<i64: 16, 128>}, {transform_indices = @transform_1, window_bounds = array<i64: 16, 128>}]} {
    %c0 = arith.constant 0 : index
    %c0_0 = arith.constant 0 : index
    %0 = vector.load %arg1[%c0, %c0_0] : memref<16x128xf32, #tpu.memory_space<vmem>>, vector<16x128xf32>
    %cst = arith.constant 5.000000e-01 : f32
    %1 = vector.broadcast %cst : f32 to vector<16x128xf32>
    %2 = arith.mulf %1, %0 : vector<16x128xf32>
    %3 = math.absf %0 : vector<16x128xf32>
    %4 = arith.mulf %2, %3 : vector<16x128xf32>
    %cst_1 = arith.constant 0.000000e+00 : f32
    %cst_2 = arith.constant 5.000000e-01 : f32
    %5 = vector.broadcast %cst_1 : f32 to vector<16x128xf32>
    %6 = arith.maximumf %5, %4 : vector<16x128xf32>
    %7 = vector.broadcast %cst_2 : f32 to vector<16x128xf32>
    %8 = arith.minimumf %7, %6 : vector<16x128xf32>
    %cst_3 = arith.constant -5.000000e-01 : f32
    %9 = vector.broadcast %cst_3 : f32 to vector<16x128xf32>
    %10 = arith.addf %0, %9 : vector<16x128xf32>
    %11 = arith.maximumf %8, %10 : vector<16x128xf32>
    %c0_4 = arith.constant 0 : index
    %c0_5 = arith.constant 0 : index
    %12 = vector.load %arg2[%c0_4, %c0_5] : memref<16x128xf32, #tpu.memory_space<vmem>>, vector<16x128xf32>
    tpu.vector_store %arg2[%c0_4, %c0_5], %11 {strides = array<i32>} : memref<16x128xf32, #tpu.memory_space<vmem>>, vector<16x128xf32>,
    return
  }
  func.func @transform_0(%arg0: i32) -> (i32, i32) {
    %c0_i32 = arith.constant 0 : i32
    %c0_i32_0 = arith.constant 0 : i32
    return %arg0, %c0_i32 : i32, i32
  }
  func.func @transform_1(%arg0: i32) -> (i32, i32) {
    %c0_i32 = arith.constant 0 : i32
    %c0_i32_0 = arith.constant 0 : i32
    return %arg0, %c0_i32 : i32, i32
  }
}

</mosaic_0001>

<bundles_post_ra>
// kernel: tpu_custom_call.1
= control target key start
LH: loop header
LB: loop body
LE: loop exit
PB: predicated region body
PF: predicated region fallthrough
CT: control target
= control target key end

     0   :  { %6 = vsyncpa [#allocation3], 0  ;;  %s144_s0 = inlined_call_operand.hbm [shape: f32[16,128], index: 0, kind: input, shape index: {}]   ;;  %s145_s1 = inlined_call_operand.hbm [shape: f32[16,128], index: 1, kind: output, shape index: {}]  }
   0x1   :  { %7 = vsyncpa [#allocation4], 0  ;;  %s12_s8 = sshll.u32 %s144_s0, 4  ;;  %s118_s9 = smov [#allocation2]   ;;  %s13_s8 = int_to_ptr.hbm [resolvable:$true] %s12_s8 }
   0x2   :  { %s14_s10 = sshll.u32 %s118_s9, 4  ;;  %s119_s11 = smov 128   ;;  %s15_s10 = int_to_ptr.vmem [resolvable:$true] %s14_s10 }
   0x3   :  { %s120_s12 = smov 8  }
   0x4   :  { %20 = dma.hbm_to_vmem [thread:$0]  %s13_s8, 256, %s15_s10, [#allocation3], %s119_s11, %s119_s11, %s120_s12  }
   0x5   :  { %114 = dma.done.wait [#allocation3], 256  }
   0x6   :  { %115 = vsyncadd [#allocation3], 4294967040  ;;  %v25_v0 = vld [vmem:[#allocation2] sm:$0xff]  ;;  %v26_v1 = vld [vmem:[#allocation2 + $0x8] sm:$0xff]  ;;  %s121_s0 = smov [#allocation5]   ;;  %s49_s16 = sshll.u32 %s145_s1, 4  ;;  %s50_s16 = int_to_ptr.hbm [resolvable:$true] %s49_s16 }
   0x7   :  { %v27_v2 = vmul.f32 0.5, %v25_v0  ;;  %v29_v3 = vand.u32 2147483647, %v25_v0  ;;  %v28_v4 = vmul.f32 0.5, %v26_v1  ;;  %v30_v5 = vand.u32 2147483647, %v26_v1 }
   0x8   :  { %v37_v9 = vadd.f32 -0.5, %v25_v0  ;;  %v38_v11 = vadd.f32 -0.5, %v26_v1  ;;  %s47_s13 = sshll.u32 %s121_s0, 4  ;;  %s48_s13 = int_to_ptr.vmem [resolvable:$true] %s47_s13 }
   0x9   :  { %v31_v6 = vmul.f32 %v29_v3, %v27_v2  ;;  %v32_v7 = vmul.f32 %v30_v5, %v28_v4 }
   0xb   :  { %v33_v8 = vmax.f32 %v31_v6, 0.0  ;;  %v34_v10 = vmax.f32 %v32_v7, 0.0 }
   0xd   :  { %v35_v12 = vmin.f32 %v33_v8, 0.5  ;;  %v36_v13 = vmin.f32 %v34_v10, 0.5 }
   0xf   :  { %v39_v14 = vmax.f32 %v35_v12, %v37_v9  ;;  %v40_v15 = vmax.f32 %v36_v13, %v38_v11 }
  0x11   :  { %41 = vst [vmem:[#allocation5] sm:$0xff] %v39_v14 }
  0x12   :  { %42 = vst [vmem:[#allocation5 + $0x8] sm:$0xff] %v40_v15 }
  0x13   :  { %55 = dma.vmem_to_hbm [thread:$0]  %s48_s13, 256, %s50_s16, [#allocation4], %s119_s11, %s119_s11, %s120_s12  }
  0x14   :  { %116 = dma.done.wait [#allocation4], 256  }
  0x15   :  { %117 = vsyncadd [#allocation4], 4294967040 }
  0x16   :  { %60 = vsyncpa [#allocation3], 1 }
  0x17   :  { %61 = vsyncpa [#allocation4], 1 }

</bundles_post_ra>
